<compile_context>
chip_gen: v6e
topology: v6e:2x2x1
jax: 0.10.0
libtpu: 0.0.40
codegen_flags: <defaults>
</compile_context>

<pallas_src>
import jax
import jax.numpy as jnp
from jax import lax
from jax.experimental import pallas as pl
from jax.experimental.pallas import tpu as pltpu


def _make_sp_kernel(D, tk, needs_mask):
    """Kernel: accumulate partial Gram matrices for one core's share of D."""

    def kernel(s_ref, t_ref, gs_ref, gt_ref):
        k = pl.program_id(1)

        @pl.when(k == 0)
        def _():
            gs_ref[...] = jnp.zeros_like(gs_ref)
            gt_ref[...] = jnp.zeros_like(gt_ref)

        s = s_ref[...]          # (B, tk), f32 or bf16
        t = t_ref[...]

        if needs_mask:
            # Global element offset of this tile; zero lanes >= D so the
            # ragged last tile (and a possibly duplicated, fully-OOB overflow
            # tile on the second core) contributes nothing to the Gram.
            c = pl.program_id(0)
            g = c * pl.num_programs(1) + k
            start = g * tk
            lane = lax.broadcasted_iota(jnp.int32, s_ref.shape, 1)
            valid = (start + lane) < D
            s = jnp.where(valid, s, jnp.zeros_like(s))
            t = jnp.where(valid, t, jnp.zeros_like(t))

        # Contract dim 1 of both operands (== s @ s.T) on the MXU, f32
        # accumulation straight into the resident output blocks.
        dn = (((1,), (1,)), ((), ()))
        gs_ref[...] += lax.dot_general(s, s, dn,
                                       preferred_element_type=jnp.float32)
        gt_ref[...] += lax.dot_general(t, t, dn,
                                       preferred_element_type=jnp.float32)

    return kernel


def _generation_config():
    """(input_budget_bytes, vmem_limit_bytes, num_cores) for this TPU gen."""
    kind = ""
    try:
        kind = jax.devices()[0].device_kind.lower()
    except Exception:  # pragma: no cover - defensive
        pass
    multi_tc = any(tag in kind for tag in ("v7", "v5p", "v4"))
    if multi_tc:
        # v7x has only 64 MiB VMEM per TensorCore -> stay well under it.
        return 40 * 1024 * 1024, 48 * 1024 * 1024, 2
    # v5e / v6e: 128 MiB VMEM, single TensorCore.
    return 64 * 1024 * 1024, 96 * 1024 * 1024, 1


def _choose_tk(B, D, itemsize, input_budget_bytes, max_tk=128 * 1024):
    """Largest 128-aligned feature tile whose double-buffered input footprint
    (2 inputs x 2 pipeline buffers x B x tk x itemsize) fits the budget."""
    tk_cap = input_budget_bytes // (4 * B * itemsize)
    tk_cap = max(128, (tk_cap // 128) * 128)
    d_up = ((D + 127) // 128) * 128
    return int(min(tk_cap, max_tk, d_up))


def sp_loss(fm_s, fm_t, *, tk=None, num_cores=None, cast_bf16=False):
    """SP distillation loss.  fm_s, fm_t: (B, ...) feature maps, f32 or bf16."""
    B = fm_s.shape[0]
    assert fm_t.shape[0] == B

    def _prep(x):
        x2d = x.reshape(B, -1)                      # identical to torch .view(B, -1)
        if cast_bf16:
            return x2d.astype(jnp.bfloat16)
        if x2d.dtype not in (jnp.bfloat16, jnp.float32):
            x2d = x2d.astype(jnp.float32)
        return x2d

    s2d = _prep(fm_s)
    t2d = _prep(fm_t)
    if s2d.dtype != t2d.dtype:
        s2d = s2d.astype(jnp.float32)
        t2d = t2d.astype(jnp.float32)
    D = s2d.shape[1]
    assert t2d.shape == (B, D)

    if 2 * B * B * 4 > 8 * 1024 * 1024:
        # TODO(synk): tile the (B, B) Gram accumulators over B for very large
        # batches; resident accumulators would not fit VMEM on v7x.
        raise NotImplementedError("SP kernel: batch too large for resident Gram")

    itemsize = jnp.dtype(s2d.dtype).itemsize
    input_budget, vmem_limit, auto_cores = _generation_config()
    if tk is None:
        tk = _choose_tk(B, D, itemsize, input_budget)
    num_tiles = -(-D // tk)
    if num_cores is None:
        num_cores = auto_cores
    if num_tiles < 2:
        num_cores = 1
    num_k = -(-num_tiles // num_cores)              # D tiles per core
    needs_mask = (num_cores * num_k * tk) != D      # ragged last / overflow tile
    last_tile = num_tiles - 1

    def in_map(c, k):
        # Contiguous split: core c streams tiles [c*num_k, (c+1)*num_k).
        # The clamp keeps the (fully masked) overflow tile of the second core
        # in bounds when num_tiles is odd.
        return (0, jnp.minimum(c * num_k + k, last_tile))

    out_map = lambda c, k: (c, 0, 0)

    gs_part, gt_part = pl.pallas_call(
        _make_sp_kernel(D, tk, needs_mask),
        out_shape=(jax.ShapeDtypeStruct((num_cores, B, B), jnp.float32),
                   jax.ShapeDtypeStruct((num_cores, B, B), jnp.float32)),
        grid_spec=pltpu.PrefetchScalarGridSpec(
            num_scalar_prefetch=0,
            grid=(num_cores, num_k),
            in_specs=[
                pl.BlockSpec((B, tk), in_map),
                pl.BlockSpec((B, tk), in_map),
            ],
            out_specs=[
                pl.BlockSpec((None, B, B), out_map),
                pl.BlockSpec((None, B, B), out_map),
            ],
        ),
        compiler_params=pltpu.CompilerParams(
            dimension_semantics=("parallel", "arbitrary"),
            vmem_limit_bytes=vmem_limit,
        ),
    )(s2d, t2d)

    # Tiny epilogue (2*B*B elements) in plain jnp: combine per-core partial
    # Grams, row-normalize (F.normalize p=2 dim=1), MSE over B*B entries.
    gs = jnp.sum(gs_part, axis=0)
    gt = jnp.sum(gt_part, axis=0)
    # x / max(||x||_2, 1e-12) == x * rsqrt(max(sum(x^2), 1e-24))
    inv_s = lax.rsqrt(jnp.maximum(jnp.sum(gs * gs, axis=1, keepdims=True), 1e-24))
    inv_t = lax.rsqrt(jnp.maximum(jnp.sum(gt * gt, axis=1, keepdims=True), 1e-24))
    diff = gs * inv_s - gt * inv_t
    return jnp.mean(diff * diff)


def _sp_loss_ref(fm_s, fm_t):
    B = fm_s.shape[0]
    s = fm_s.reshape(B, -1).astype(jnp.float32)
    t = fm_t.reshape(B, -1).astype(jnp.float32)
    gs = jnp.dot(s, s.T, precision="highest")
    gt = jnp.dot(t, t.T, precision="highest")
    gs = gs / jnp.maximum(jnp.linalg.norm(gs, axis=1, keepdims=True), 1e-12)
    gt = gt / jnp.maximum(jnp.linalg.norm(gt, axis=1, keepdims=True), 1e-12)
    return jnp.mean((gs - gt) ** 2)


if __name__ == "__main__":
    key = jax.random.PRNGKey(0)
    k1, k2, k3, k4 = jax.random.split(key, 4)

    sp = jax.jit(sp_loss, static_argnames=("tk", "num_cores", "cast_bf16"))

    def _close(a, b, rtol=5e-3, atol=3e-5):
        return abs(float(a) - float(b)) <= rtol * abs(float(b)) + atol

    # Case 1: B=8, C=4, H=W=16 -> D=1024 (auto tk -> single tile, single core).
    B, C, H, W = 8, 4, 16, 16
    fm_s = jax.random.normal(k1, (B, C, H, W), dtype=jnp.float32)
    fm_t = jax.random.normal(k2, (B, C, H, W), dtype=jnp.float32)
    ref = jax.block_until_ready(_sp_loss_ref(fm_s, fm_t))

    loss = jax.block_until_ready(sp(fm_s, fm_t))
    assert jnp.isfinite(loss)
    assert _close(loss, ref), (float(loss), float(ref))

    # Case 2: forced small tile -> multi-step accumulation on one core stream.
    loss2 = jax.block_until_ready(sp(fm_s, fm_t, tk=256, num_cores=1))
    assert _close(loss2, ref), (float(loss2), float(ref))

    # Case 3: forced 2-way core split with an odd tile count (exercises the
    # clamped overflow tile, the in-kernel ragged mask, and the jnp combine).
    loss3 = jax.block_until_ready(sp(fm_s, fm_t, tk=384, num_cores=2))
    assert _close(loss3, ref), (float(loss3), float(ref))

    # Case 4: non-divisible feature dim (D = 3*10*10 = 300) -> masked last
    # tile, no HBM padding copy.
    fm_s4 = jax.random.normal(k3, (B, 3, 10, 10), dtype=jnp.float32)
    fm_t4 = jax.random.normal(k4, (B, 3, 10, 10), dtype=jnp.float32)
    loss4 = jax.block_until_ready(sp(fm_s4, fm_t4))
    ref4 = jax.block_until_ready(_sp_loss_ref(fm_s4, fm_t4))
    assert _close(loss4, ref4), (float(loss4), float(ref4))

    # Case 5: optional bf16 input path (bandwidth saver; loose tolerance since
    # Gram products become bf16-precision).
    loss5 = jax.block_until_ready(sp(fm_s, fm_t, cast_bf16=True))
    assert jnp.isfinite(loss5)
    assert _close(loss5, ref, rtol=1e-1, atol=1e-3), (float(loss5), float(ref))

    print("KERNEL_OK")
</pallas_src>

<mosaic_0001>
module attributes {stable_mosaic.version = 11 : i64} {
  func.func @kernel(%arg0: i32, %arg1: i32, %arg2: memref<8x1024xf32, #tpu.memory_space<vmem>>, %arg3: memref<8x1024xf32, #tpu.memory_space<vmem>>, %arg4: memref<1x8x8xf32, #tpu.memory_space<vmem>>, %arg5: memref<1x8x8xf32, #tpu.memory_space<vmem>>) attributes {dimension_semantics = [#tpu.dimension_semantics<parallel>, #tpu.dimension_semantics<arbitrary>], iteration_bounds = array<i64: 1, 1>, scalar_prefetch = 0 : i64, scratch_operands = 0 : i64, tpu.core_type = #tpu.core_type<tc>, window_params = [{transform_indices = @transform_0, window_bounds = array<i64: 8, 1024>}, {transform_indices = @transform_1, window_bounds = array<i64: 8, 1024>}, {transform_indices = @transform_2, window_bounds = array<i64: 1, 8, 8>}, {transform_indices = @transform_3, window_bounds = array<i64: 1, 8, 8>}]} {
    %c0_i32 = arith.constant 0 : i32
    %0 = arith.cmpi eq, %arg1, %c0_i32 : i32
    %1 = arith.extui %0 : i1 to i32
    %c0_i32_0 = arith.constant 0 : i32
    %2 = arith.cmpi ne, %1, %c0_i32_0 : i32
    scf.if %2 {
      %cst_17 = arith.constant 0.000000e+00 : f32
      %19 = vector.broadcast %cst_17 : f32 to vector<8x8xf32>
      %c0_18 = arith.constant 0 : index
      %c0_19 = arith.constant 0 : index
      %c0_20 = arith.constant 0 : index
      %20 = vector.load %arg4[%c0_18, %c0_19, %c0_20] : memref<1x8x8xf32, #tpu.memory_space<vmem>>, vector<1x8x8xf32>
      %21 = vector.shape_cast %20 : vector<1x8x8xf32> to vector<8x8xf32>
      %22 = vector.shape_cast %19 : vector<8x8xf32> to vector<1x8x8xf32>
      tpu.vector_store %arg4[%c0_18, %c0_19, %c0_20], %22 {strides = array<i32>} : memref<1x8x8xf32, #tpu.memory_space<vmem>>, vector<1x8x8xf32>,
      %cst_21 = arith.constant 0.000000e+00 : f32
      %23 = vector.broadcast %cst_21 : f32 to vector<8x8xf32>
      %c0_22 = arith.constant 0 : index
      %c0_23 = arith.constant 0 : index
      %c0_24 = arith.constant 0 : index
      %24 = vector.load %arg5[%c0_22, %c0_23, %c0_24] : memref<1x8x8xf32, #tpu.memory_space<vmem>>, vector<1x8x8xf32>
      %25 = vector.shape_cast %24 : vector<1x8x8xf32> to vector<8x8xf32>
      %26 = vector.shape_cast %23 : vector<8x8xf32> to vector<1x8x8xf32>
      tpu.vector_store %arg5[%c0_22, %c0_23, %c0_24], %26 {strides = array<i32>} : memref<1x8x8xf32, #tpu.memory_space<vmem>>, vector<1x8x8xf32>,
    } else {
    }
    %c0 = arith.constant 0 : index
    %c0_1 = arith.constant 0 : index
    %3 = vector.load %arg2[%c0, %c0_1] : memref<8x1024xf32, #tpu.memory_space<vmem>>, vector<8x1024xf32>
    %c0_2 = arith.constant 0 : index
    %c0_3 = arith.constant 0 : index
    %4 = vector.load %arg3[%c0_2, %c0_3] : memref<8x1024xf32, #tpu.memory_space<vmem>>, vector<8x1024xf32>
    %c0_4 = arith.constant 0 : index
    %c0_5 = arith.constant 0 : index
    %c0_6 = arith.constant 0 : index
    %5 = vector.load %arg4[%c0_4, %c0_5, %c0_6] : memref<1x8x8xf32, #tpu.memory_space<vmem>>, vector<1x8x8xf32>
    %6 = vector.shape_cast %5 : vector<1x8x8xf32> to vector<8x8xf32>
    %cst = arith.constant dense<0.000000e+00> : vector<8x8xf32>
    %7 = tpu.matmul %3, %3, %cst {dimension_numbers = #tpu.dot_dimension_numbers<[1], [1], [0], [0], [0, 0, 1, 0], [], []>} : vector<8x1024xf32>, vector<8x1024xf32>, vector<8x8xf32> -> vector<8x8xf32>
    %8 = arith.addf %6, %7 : vector<8x8xf32>
    %c0_7 = arith.constant 0 : index
    %c0_8 = arith.constant 0 : index
    %c0_9 = arith.constant 0 : index
    %9 = vector.load %arg4[%c0_7, %c0_8, %c0_9] : memref<1x8x8xf32, #tpu.memory_space<vmem>>, vector<1x8x8xf32>
    %10 = vector.shape_cast %9 : vector<1x8x8xf32> to vector<8x8xf32>
    %11 = vector.shape_cast %8 : vector<8x8xf32> to vector<1x8x8xf32>
    tpu.vector_store %arg4[%c0_7, %c0_8, %c0_9], %11 {strides = array<i32>} : memref<1x8x8xf32, #tpu.memory_space<vmem>>, vector<1x8x8xf32>,
    %c0_10 = arith.constant 0 : index
    %c0_11 = arith.constant 0 : index
    %c0_12 = arith.constant 0 : index
    %12 = vector.load %arg5[%c0_10, %c0_11, %c0_12] : memref<1x8x8xf32, #tpu.memory_space<vmem>>, vector<1x8x8xf32>
    %13 = vector.shape_cast %12 : vector<1x8x8xf32> to vector<8x8xf32>
    %cst_13 = arith.constant dense<0.000000e+00> : vector<8x8xf32>
    %14 = tpu.matmul %4, %4, %cst_13 {dimension_numbers = #tpu.dot_dimension_numbers<[1], [1], [0], [0], [0, 0, 1, 0], [], []>} : vector<8x1024xf32>, vector<8x1024xf32>, vector<8x8xf32> -> vector<8x8xf32>
    %15 = arith.addf %13, %14 : vector<8x8xf32>
    %c0_14 = arith.constant 0 : index
    %c0_15 = arith.constant 0 : index
    %c0_16 = arith.constant 0 : index
    %16 = vector.load %arg5[%c0_14, %c0_15, %c0_16] : memref<1x8x8xf32, #tpu.memory_space<vmem>>, vector<1x8x8xf32>
    %17 = vector.shape_cast %16 : vector<1x8x8xf32> to vector<8x8xf32>
    %18 = vector.shape_cast %15 : vector<8x8xf32> to vector<1x8x8xf32>
    tpu.vector_store %arg5[%c0_14, %c0_15, %c0_16], %18 {strides = array<i32>} : memref<1x8x8xf32, #tpu.memory_space<vmem>>, vector<1x8x8xf32>,
    return
  }
  func.func @transform_0(%arg0: i32, %arg1: i32) -> (i32, i32) {
    %c1_i32 = arith.constant 1 : i32
    %0 = arith.muli %arg0, %c1_i32 : i32
    %1 = arith.addi %0, %arg1 : i32
    %c0_i32 = arith.constant 0 : i32
    %2 = arith.minsi %1, %c0_i32 : i32
    %c0_i32_0 = arith.constant 0 : i32
    %c0_i32_1 = arith.constant 0 : i32
    return %c0_i32_0, %2 : i32, i32
  }
  func.func @transform_1(%arg0: i32, %arg1: i32) -> (i32, i32) {
    %c1_i32 = arith.constant 1 : i32
    %0 = arith.muli %arg0, %c1_i32 : i32
    %1 = arith.addi %0, %arg1 : i32
    %c0_i32 = arith.constant 0 : i32
    %2 = arith.minsi %1, %c0_i32 : i32
    %c0_i32_0 = arith.constant 0 : i32
    %c0_i32_1 = arith.constant 0 : i32
    return %c0_i32_0, %2 : i32, i32
  }
  func.func @transform_2(%arg0: i32, %arg1: i32) -> (i32, i32, i32) {
    %c0_i32 = arith.constant 0 : i32
    %c0_i32_0 = arith.constant 0 : i32
    %c0_i32_1 = arith.constant 0 : i32
    return %arg0, %c0_i32, %c0_i32_0 : i32, i32, i32
  }
  func.func @transform_3(%arg0: i32, %arg1: i32) -> (i32, i32, i32) {
    %c0_i32 = arith.constant 0 : i32
    %c0_i32_0 = arith.constant 0 : i32
    %c0_i32_1 = arith.constant 0 : i32
    return %arg0, %c0_i32, %c0_i32_0 : i32, i32, i32
  }
}

</mosaic_0001>

<bundles_post_ra>
// kernel: sp_loss.1
= control target key start
LH: loop header
LB: loop body
LE: loop exit
PB: predicated region body
PF: predicated region fallthrough
CT: control target
= control target key end

     0   :  { %vm81_vm0 = vcmask 64512   ;;  %v688_v16 = vmov 0.0   ;;  %s779_s0 = inlined_call_operand.vmem [shape: f32[8,1024], index: 0, kind: input, shape index: {}]   ;;  %s780_s1 = inlined_call_operand.vmem [shape: f32[8,1024], index: 1, kind: input, shape index: {}]   ;;  %s781_s2 = inlined_call_operand.vmem [shape: f32[1,8,8], index: 2, kind: output, shape index: {0}]   ;;  %s782_s3 = inlined_call_operand.vmem [shape: f32[1,8,8], index: 3, kind: output, shape index: {1}]  }
   0x1   :  { %v85_v0 = vld [vmem:[%s779_s0 + $0x8] sm:$0xff]  ;;  %v84_v1 = vld [vmem:[%s779_s0] sm:$0xff]  ;;  %v87_v2 = vld [vmem:[%s779_s0 + $0x18] sm:$0xff]  ;;  %82 = vst.msk [vmem:[%s781_s2] sm:$0xff] %vm81_vm0, %v688_v16 }
   0x2   :  { %131 = vmatprep.subr.mxu0 %v85_v0  ;;  %201 = vmatprep.subr.mxu1 %v87_v2  ;;  %v86_v3 = vld [vmem:[%s779_s0 + $0x10] sm:$0xff]  ;;  %v89_v4 = vld [vmem:[%s779_s0 + $0x28] sm:$0xff]  ;;  %v91_v5 = vld [vmem:[%s779_s0 + $0x38] sm:$0xff]  ;;  %83 = vst.msk [vmem:[%s782_s3] sm:$0xff] %vm81_vm0, %v688_v16 }
   0x3   :  { %132 = vmatpush1.xpose.msra.mxu0 %v84_v1  ;;  %202 = vmatpush1.xpose.msra.mxu1 %v86_v3  ;;  %v88_v6 = vld [vmem:[%s779_s0 + $0x20] sm:$0xff]  ;;  %v90_v7 = vld [vmem:[%s779_s0 + $0x30] sm:$0xff]  ;;  %v93_v8 = vld [vmem:[%s780_s1 + $0x8] sm:$0xff] }
   0x4   :  { %165 = vmatprep.mubr.f32.mxu0 %v85_v0  ;;  %235 = vmatprep.mubr.f32.mxu1 %v87_v2  ;;  %v95_v9 = vld [vmem:[%s780_s1 + $0x18] sm:$0xff]  ;;  %v92_v10 = vld [vmem:[%s780_s1] sm:$0xff]  ;;  %v94_v11 = vld [vmem:[%s780_s1 + $0x10] sm:$0xff] }
   0x5   :  { %271 = vmatprep.subr.mxu0 %v89_v4  ;;  %341 = vmatprep.subr.mxu1 %v91_v5  ;;  %v97_v12 = vld [vmem:[%s780_s1 + $0x28] sm:$0xff]  ;;  %v99_v13 = vld [vmem:[%s780_s1 + $0x38] sm:$0xff]  ;;  %v96_v14 = vld [vmem:[%s780_s1 + $0x20] sm:$0xff] }
   0x6   :  { %166 = vmatmul.mubr.f32.vlgmr.msra.gmra.mxu0 %v84_v1  ;;  %236 = vmatmul.mubr.f32.vlgmr.msra.gmra.mxu1 %v86_v3  ;;  %v98_v15 = vld [vmem:[%s780_s1 + $0x30] sm:$0xff] }
   0x7   :  { %272 = vmatpush1.xpose.msra.mxu0 %v88_v6  ;;  %342 = vmatpush1.xpose.msra.mxu1 %v90_v7 }
   0x8   :  { %305 = vmatprep.mubr.f32.mxu0 %v89_v4  ;;  %375 = vmatprep.mubr.f32.mxu1 %v91_v5  ;;  %v100_v25 = vld [vmem:[%s781_s2] sm:$0xff] }
   0x9   :  { %415 = vmatprep.subr.mxu0 %v93_v8  ;;  %485 = vmatprep.subr.mxu1 %v95_v9  ;;  %v384_v38 = vld [vmem:[%s782_s3] sm:$0xff] }
   0xa   :  { %306 = vmatmul.mubr.f32.vlgmr.msra.gmra.mxu0 %v88_v6  ;;  %376 = vmatmul.mubr.f32.vlgmr.msra.gmra.mxu1 %v90_v7 }
   0xb   :  { %416 = vmatpush1.xpose.msra.mxu0 %v92_v10  ;;  %486 = vmatpush1.xpose.msra.mxu1 %v94_v11 }
   0xc   :  { %449 = vmatprep.mubr.f32.mxu0 %v93_v8  ;;  %519 = vmatprep.mubr.f32.mxu1 %v95_v9 }
   0xd   :  { %555 = vmatprep.subr.mxu0 %v97_v12  ;;  %625 = vmatprep.subr.mxu1 %v99_v13 }
   0xe   :  { %450 = vmatmul.mubr.f32.vlgmr.msra.gmra.mxu0 %v92_v10  ;;  %520 = vmatmul.mubr.f32.vlgmr.msra.gmra.mxu1 %v94_v11 }
   0xf   :  { %556 = vmatpush1.xpose.msra.mxu0 %v96_v14  ;;  %626 = vmatpush1.xpose.msra.mxu1 %v98_v15 }
  0x10   :  { %589 = vmatprep.mubr.f32.mxu0 %v97_v12  ;;  %659 = vmatprep.mubr.f32.mxu1 %v99_v13 }
  0x12   :  { %590 = vmatmul.mubr.f32.vlgmr.msra.gmra.mxu0 %v96_v14  ;;  %660 = vmatmul.mubr.f32.vlgmr.msra.gmra.mxu1 %v98_v15 }
  0xc6   :  { %v167_v17 = vpop.f32.mrf.mxu0  ;;  %v237_v18 = vpop.f32.mrf.mxu1 }
  0xc7   :  { %v238_v21 = vadd.f32 %v237_v18, %v167_v17 }
  0xc8   :  { %v169_v19 = vpop.f32.mrf.mxu0  ;;  %v239_v20 = vpop.f32.mrf.mxu1 }
  0xca   :  { %v307_v22 = vpop.f32.mrf.mxu0  ;;  %v377_v23 = vpop.f32.mrf.mxu1 }
  0xcb   :  { %v308_v24 = vadd.f32 %v307_v22, %v238_v21 }
  0xcc   :  { %v309_v26 = vpop.f32.mrf.mxu0  ;;  %v379_v27 = vpop.f32.mrf.mxu1 }
  0xcd   :  { %v378_v28 = vadd.f32 %v377_v23, %v308_v24 }
  0xce   :  { %v451_v29 = vpop.f32.mrf.mxu0  ;;  %v521_v30 = vpop.f32.mrf.mxu1 }
  0xcf   :  { %v381_v31 = vadd.f32 %v378_v28, %v100_v25  ;;  %v522_v34 = vadd.f32 %v521_v30, %v451_v29 }
  0xd0   :  { %v453_v32 = vpop.f32.mrf.mxu0  ;;  %v523_v33 = vpop.f32.mrf.mxu1 }
  0xd1   :  { %383 = vst.msk [vmem:[%s781_s2] sm:$0xff] %vm81_vm0, %v381_v31 }
  0xd2   :  { %v591_v35 = vpop.f32.mrf.mxu0  ;;  %v661_v36 = vpop.f32.mrf.mxu1 }
  0xd3   :  { %v592_v37 = vadd.f32 %v591_v35, %v522_v34 }
  0xd4   :  { %v593_v39 = vpop.f32.mrf.mxu0  ;;  %v663_v40 = vpop.f32.mrf.mxu1 }
  0xd5   :  { %v662_v41 = vadd.f32 %v661_v36, %v592_v37 }
  0xd7   :  { %v665_v42 = vadd.f32 %v662_v41, %v384_v38 }
  0xd9   :  { %666 = vst.msk [vmem:[%s782_s3] sm:$0xff] %vm81_vm0, %v665_v42 }

</bundles_post_ra>
